<compile_context>
chip_gen: v5e
topology: v5e:2x2
jax: 0.10.0
libtpu: 0.0.40
codegen_flags: <defaults>
</compile_context>

<pallas_src>
import math

import jax
import jax.numpy as jnp
from jax.experimental import pallas as pl
from jax.experimental.pallas import tpu as pltpu


# ---------------------------------------------------------------------------
# Pallas kernel: per-row broadcast multiply, o = x * m.
#   x block: (ROW_TILE, COL_TILE)
#   m block: (ROW_TILE, 1)        -- per-(B,C) mask, broadcast along lanes
#         or (ROW_TILE, COL_TILE) -- modality with no spatial axis
# ---------------------------------------------------------------------------
def _row_scale_kernel(x_ref, m_ref, o_ref):
    o_ref[...] = x_ref[...] * m_ref[...]


_ROW_CANDIDATES = (256, 128, 64, 32, 16, 8)
_COL_CANDIDATES = (1024, 512, 256, 128)
_ROW_CAP = 256   # sublane rows per tile
_COL_CAP = 1024  # lanes per tile: 512-1024 lanes ~ 85% of HBM roofline, and
                 # double-buffered in+out tiles stay ~4 MiB even on v5e/v7x.


def _pick_tile(dim, candidates, cap):
    """Largest candidate <= cap that evenly divides dim, else the full dim."""
    if dim <= cap:
        return dim
    for c in candidates:
        if c <= cap and dim % c == 0:
            return c
    return dim  # fall back: no tiling on this axis (always legal)


def _row_broadcast_multiply(x2d, m2d):
    """y[r, s] = x2d[r, s] * m2d[r, 0]   (or elementwise if m2d matches x2d)."""
    R, S = x2d.shape
    row_tile = _pick_tile(R, _ROW_CANDIDATES, _ROW_CAP)
    col_tile = _pick_tile(S, _COL_CANDIDATES, _COL_CAP)
    grid = (R // row_tile, S // col_tile)

    if m2d.shape[1] == 1:
        # Per-row mask: same (row_tile, 1) block reused across spatial tiles.
        m_spec = pl.BlockSpec((row_tile, 1), lambda i, j: (i, 0))
    else:
        m_spec = pl.BlockSpec((row_tile, col_tile), lambda i, j: (i, j))

    return pl.pallas_call(
        _row_scale_kernel,
        out_shape=jax.ShapeDtypeStruct((R, S), x2d.dtype),
        grid=grid,
        in_specs=[pl.BlockSpec((row_tile, col_tile), lambda i, j: (i, j)),
                  m_spec],
        out_specs=pl.BlockSpec((row_tile, col_tile), lambda i, j: (i, j)),
        compiler_params=pltpu.CompilerParams(
            dimension_semantics=("parallel", "parallel")),
    )(x2d, m2d)


# ---------------------------------------------------------------------------
# BlockDropout.forward
# ---------------------------------------------------------------------------
def block_dropout(X, p=0.5, key=None, training=True):
    """Pallas implementation of BlockDropout.forward.

    X: list of jnp arrays, each [B, C_i, *spatial] (spatial may be empty).
    Returns (masked X list, grouped mask list) in training mode, else (X, None).
    """
    if p < 0 or p > 1:
        raise ValueError(
            "dropout probability has to be between 0 and 1, but got {}".format(p))
    if not training:
        return X, None
    if key is None:
        key = jax.random.PRNGKey(0)

    B = int(X[0].shape[0])
    chans = [int(x.shape[1]) for x in X]
    c_total = sum(chans)

    # Mask is tiny; draw it once in plain JAX (see header note re: prng_seed).
    if p >= 1.0:
        mask = jnp.zeros((B, c_total), dtype=jnp.float32)
    else:
        keep_prob = 1.0 - p
        mask = (jax.random.bernoulli(key, keep_prob, (B, c_total))
                .astype(jnp.float32) * jnp.float32(1.0 / keep_prob))

    outs = []
    grouped_masks = []
    off = 0
    for x, c in zip(X, chans):
        m = mask[:, off:off + c]                       # (B, C_i) float32
        off += c
        spatial = int(math.prod(x.shape[2:])) if x.ndim > 2 else 1
        if spatial > 1:
            # (B*C, S): mask is one value per sublane row, broadcast over lanes.
            x2d = x.reshape(B * c, spatial)
            m2d = m.reshape(B * c, 1).astype(x.dtype)
        else:
            # No spatial axis: keep the (larger) channel axis on the lanes.
            x2d = x.reshape(B, c)
            m2d = m.astype(x.dtype)
        y2d = _row_broadcast_multiply(x2d, m2d)
        outs.append(y2d.reshape(x.shape))
        grouped_masks.append(m.reshape(list(x.shape[:2]) + [1] * (x.ndim - 2)))
    return outs, grouped_masks


if __name__ == "__main__":
    root = jax.random.PRNGKey(0)
    k1, k2, k3, k4, kmask = jax.random.split(root, 5)

    # Modalities: NCHW feature maps (one big enough to exercise a multi-step
    # spatial grid) plus one with no spatial dims.
    x1 = jax.random.normal(k1, (2, 4, 16, 16), dtype=jnp.float32)
    x2 = jax.random.normal(k2, (2, 6, 8, 8), dtype=jnp.float32)
    x3 = jax.random.normal(k3, (2, 3, 64, 64), dtype=jnp.float32)  # S=4096 -> grid (1, 4)
    x4 = jax.random.normal(k4, (2, 5), dtype=jnp.float32)          # no spatial dims

    p = 0.5
    X = [x1, x2, x3, x4]
    Y, masks = block_dropout(X, p=p, key=kmask, training=True)
    for y in Y:
        jax.block_until_ready(y)
    for m in masks:
        jax.block_until_ready(m)

    # Consistency checks: mask values in {0, 1/(1-p)} and y == x * mask.
    scale = 1.0 / (1.0 - p)
    for m in masks:
        vals = jnp.unique(m.ravel())
        ok = jnp.all((jnp.abs(vals) < 1e-6) | (jnp.abs(vals - scale) < 1e-6))
        assert bool(ok), "mask values must be in {0, 1/(1-p)}"
    for x, y, m in zip(X, Y, masks):
        assert y.shape == x.shape
        assert bool(jnp.allclose(y, x * m, atol=1e-6)), "y != x * mask"

    # Eval mode path.
    X_eval, m_eval = block_dropout(X, p=p, training=False)
    assert m_eval is None and X_eval[0] is x1

    # p == 1.0 guard (previously a ZeroDivisionError): all-zero outputs/masks.
    Y1, M1 = block_dropout([x1], p=1.0, key=kmask, training=True)
    jax.block_until_ready(Y1[0])
    assert bool(jnp.all(Y1[0] == 0)) and bool(jnp.all(M1[0] == 0))

    print("KERNEL_OK")
</pallas_src>

<mosaic_0001>
module attributes {stable_mosaic.version = 11 : i64} {
  func.func @_row_scale_kernel(%arg0: i32, %arg1: i32, %arg2: memref<8x256xf32, #tpu.memory_space<vmem>>, %arg3: memref<8x1xf32, #tpu.memory_space<vmem>>, %arg4: memref<8x256xf32, #tpu.memory_space<vmem>>) attributes {dimension_semantics = [#tpu.dimension_semantics<parallel>, #tpu.dimension_semantics<parallel>], iteration_bounds = array<i64: 1, 1>, scalar_prefetch = 0 : i64, scratch_operands = 0 : i64, tpu.core_type = #tpu.core_type<tc>, window_params = [{transform_indices = @transform_0, window_bounds = array<i64: 8, 256>}, {transform_indices = @transform_1, window_bounds = array<i64: 8, 1>}, {transform_indices = @transform_2, window_bounds = array<i64: 8, 256>}]} {
    %c0 = arith.constant 0 : index
    %c0_0 = arith.constant 0 : index
    %0 = vector.load %arg2[%c0, %c0_0] : memref<8x256xf32, #tpu.memory_space<vmem>>, vector<8x256xf32>
    %c0_1 = arith.constant 0 : index
    %c0_2 = arith.constant 0 : index
    %1 = vector.load %arg3[%c0_1, %c0_2] : memref<8x1xf32, #tpu.memory_space<vmem>>, vector<8x1xf32>
    %2 = vector.broadcast %1 : vector<8x1xf32> to vector<8x256xf32>
    %3 = arith.mulf %0, %2 : vector<8x256xf32>
    %c0_3 = arith.constant 0 : index
    %c0_4 = arith.constant 0 : index
    %4 = vector.load %arg4[%c0_3, %c0_4] : memref<8x256xf32, #tpu.memory_space<vmem>>, vector<8x256xf32>
    tpu.vector_store %arg4[%c0_3, %c0_4], %3 {strides = array<i32>} : memref<8x256xf32, #tpu.memory_space<vmem>>, vector<8x256xf32>,
    return
  }
  func.func @transform_0(%arg0: i32, %arg1: i32) -> (i32, i32) {
    %c0_i32 = arith.constant 0 : i32
    return %arg0, %arg1 : i32, i32
  }
  func.func @transform_1(%arg0: i32, %arg1: i32) -> (i32, i32) {
    %c0_i32 = arith.constant 0 : i32
    %c0_i32_0 = arith.constant 0 : i32
    return %arg0, %c0_i32 : i32, i32
  }
  func.func @transform_2(%arg0: i32, %arg1: i32) -> (i32, i32) {
    %c0_i32 = arith.constant 0 : i32
    return %arg0, %arg1 : i32, i32
  }
}

</mosaic_0001>

<bundles_post_ra>
// kernel: tpu_custom_call.1
= control target key start
LH: loop header
LB: loop body
LE: loop exit
PB: predicated region body
PF: predicated region fallthrough
CT: control target
= control target key end

     0   :  { %7 = vsyncpa [#allocation3], 0  ;;  %s138_s0 = inlined_call_operand.hbm [shape: f32[8,256], index: 0, kind: input, shape index: {}]   ;;  %s139_s1 = inlined_call_operand.vmem [shape: f32[8,1], index: 1, kind: input, shape index: {}]   ;;  %s140_s2 = inlined_call_operand.hbm [shape: f32[8,256], index: 2, kind: output, shape index: {}]  }
   0x1   :  { %8 = vsyncpa [#allocation4], 0  ;;  %s14_s11 = sshll.u32 %s138_s0, 4  ;;  %s111_s12 = smov [#allocation2]   ;;  %s15_s11 = int_to_ptr.hbm [resolvable:$true] %s14_s11 }
   0x2   :  { %s16_s13 = sshll.u32 %s111_s12, 4  ;;  %s17_s13 = int_to_ptr.vmem [resolvable:$true] %s16_s13 }
   0x3   :  { %19 = dma.hbm_to_vmem [thread:$0]  %s15_s11, 256, %s17_s13, [#allocation3]  }
   0x4   :  { %107 = dma.done.wait [#allocation3], 256  }
   0x5   :  { %108 = vsyncadd [#allocation3], 4294967040  ;;  %v112_v0 = vmov 0   ;;  %v28_v1 = vld [vmem:[%s139_s1] sm:$0xff]  ;;  %v27_v3 = vld [vmem:[#allocation2 + $0x8] sm:$0xff]  ;;  %s113_s16 = smov [#allocation5]  }
   0x6   :  { %58 = vset.pattern.permute.xlu0 %v112_v0  ;;  %v26_v2 = vld [vmem:[#allocation2] sm:$0xff]  ;;  %s43_s17 = sshll.u32 %s113_s16, 4  ;;  %s45_s19 = sshll.u32 %s140_s2, 4  ;;  %s44_s17 = int_to_ptr.vmem [resolvable:$true] %s43_s17  ;;  %s46_s19 = int_to_ptr.hbm [resolvable:$true] %s45_s19 }
   0x7   :  { %31 = vperm.xlu0 %58, %v28_v1  }
  0x79   :  { %v32_v4 = vpop.permute.xlu0 %31 }
  0x7a   :  { %v34_v5 = vmul.f32 %v32_v4, %v26_v2  ;;  %v35_v6 = vmul.f32 %v32_v4, %v27_v3 }
  0x7c   :  { %36 = vst [vmem:[#allocation5] sm:$0xff] %v34_v5 }
  0x7d   :  { %37 = vst [vmem:[#allocation5 + $0x8] sm:$0xff] %v35_v6 }
  0x7e   :  { %48 = dma.vmem_to_hbm [thread:$0]  %s44_s17, 256, %s46_s19, [#allocation4]  }
  0x7f   :  { %109 = dma.done.wait [#allocation4], 256  }
  0x80   :  { %110 = vsyncadd [#allocation4], 4294967040 }
  0x81   :  { %53 = vsyncpa [#allocation3], 1 }
  0x82   :  { %54 = vsyncpa [#allocation4], 1 }

</bundles_post_ra>
